<compile_context>
chip_gen: v6e
topology: v6e:2x2x1
jax: 0.10.0
libtpu: 0.0.40
codegen_flags: <defaults>
</compile_context>

<pallas_src>
import functools

import jax
import jax.numpy as jnp
from jax.experimental import pallas as pl
from jax.experimental.pallas import tpu as pltpu

N = 6                      # MDA.encode hardcodes 6 views
DIM_INPUT = 32             # per-view feature dim
HIDDEN_DIMS = (32, 16, 32) # bottleneck at index 1 (= argmin)
K_LANES = N * DIM_INPUT    # 192 lane-dense width


def mda_kernel(x_ref, w_ref, b_ref, out_ref):
    """One batch tile of the fused MDA forward.

    x_ref  : (TM, 192)      bf16, per-view inputs concatenated along lanes
    w_ref  : (4, 192, 192)  bf16 weight slab:
               [0] block-diagonal init-block weights
               [1] middle Linear weight, zero-padded past Hmid output lanes
               [2] final_layer.proj1 weights (concat on out dim), zero rows past Hmid
               [3] block-diagonal final_layer.proj2 weights
    b_ref  : (4, 192)       f32 bias slab (row 1 zero-padded past Hmid)
    out_ref: (TM, 192)      f32 per-view reconstructions, lane-dense
    """
    # TODO(synk): dropout / input_noise / hidden_noise are training-only; eval
    # semantics (identity) implemented here.
    x = x_ref[...]
    b = b_ref[...]

    # encode(): concat_i ReLU(Linear_i(x_i)) as one block-diagonal matmul.
    e = jnp.dot(x, w_ref[0], preferred_element_type=jnp.float32) + b[0:1, :]
    e = jnp.maximum(e, 0.0).astype(x.dtype)

    # middle Linear (+ ReLU).  Columns >= Hmid of W[1] and lanes >= Hmid of b[1]
    # are exactly zero, so the padded lanes of h stay exactly zero after ReLU.
    h = jnp.dot(e, w_ref[1], preferred_element_type=jnp.float32) + b[1:2, :]
    h = jnp.maximum(h, 0.0).astype(x.dtype)

    # final_layer heads: proj1 (concat on out dim; rows >= Hmid are zero so the
    # padded h lanes contribute nothing) -> ReLU.
    z = jnp.dot(h, w_ref[2], preferred_element_type=jnp.float32) + b[2:3, :]
    z = jnp.maximum(z, 0.0).astype(x.dtype)

    # final_layer.proj2 (block-diagonal) -> single unmasked lane-dense store.
    o = jnp.dot(z, w_ref[3], preferred_element_type=jnp.float32) + b[3:4, :]
    out_ref[...] = o.astype(out_ref.dtype)


def _block_diag(w):
    """(N, a, b) -> (N*a, N*b) block-diagonal, off-diagonal blocks exactly zero."""
    n, a, b = w.shape
    out = jnp.zeros((n * a, n * b), w.dtype)
    for i in range(n):
        out = out.at[i * a:(i + 1) * a, i * b:(i + 1) * b].set(w[i])
    return out


def pack_mda_params(wi, bi, wm, bm, w1, b1, w2, b2, dtype=jnp.bfloat16):
    """Model-load-time packing (run ONCE, not in the per-call forward path)."""
    n, d_in, h0 = wi.shape
    hmid = wm.shape[-1]
    hlast = w1.shape[-1]
    k = n * d_in
    assert n * h0 == k and n * hlast == k, "uniform 192-lane slab needs h0==hlast==d_in"

    wi_bd = _block_diag(wi)                                                # (k, k)
    wm_pad = jnp.zeros((k, k), jnp.float32).at[:, :hmid].set(
        wm.reshape(n * h0, hmid))                                          # (k, k)
    w1_cat = jnp.transpose(w1, (1, 0, 2)).reshape(hmid, n * hlast)         # (hmid, k)
    w1_pad = jnp.zeros((k, k), jnp.float32).at[:hmid, :].set(w1_cat)       # (k, k)
    w2_bd = _block_diag(w2)                                                # (k, k)
    w_slab = jnp.stack([wi_bd, wm_pad, w1_pad, w2_bd]).astype(dtype)       # (4, k, k)

    bm_pad = jnp.zeros((k,), jnp.float32).at[:hmid].set(bm.reshape(hmid))
    b_slab = jnp.stack([bi.reshape(k), bm_pad,
                        b1.reshape(k), b2.reshape(k)]).astype(jnp.float32)  # (4, k)
    return w_slab, b_slab


@functools.partial(jax.jit, static_argnames=("block_m",))
def mda_forward(x_cat, w_slab, b_slab, *, block_m=128):
    """Lane-dense forward: (B, N*D_in) f32 -> (B, N*D_in) f32."""
    bsz, k = x_cat.shape
    assert w_slab.shape == (4, k, k) and b_slab.shape == (4, k)
    tm = block_m if bsz % block_m == 0 else bsz
    grid = (bsz // tm,)
    x_in = x_cat.astype(w_slab.dtype)   # bf16 on the MXU, f32 accumulation in-kernel

    return pl.pallas_call(
        mda_kernel,
        out_shape=jax.ShapeDtypeStruct((bsz, k), jnp.float32),
        grid_spec=pltpu.PrefetchScalarGridSpec(
            num_scalar_prefetch=0,
            grid=grid,
            in_specs=[
                pl.BlockSpec((tm, k), lambda m: (m, 0)),        # batch-tiled input
                pl.BlockSpec((4, k, k), lambda m: (0, 0, 0)),   # weights (resident)
                pl.BlockSpec((4, k), lambda m: (0, 0)),         # biases (resident)
            ],
            out_specs=pl.BlockSpec((tm, k), lambda m: (m, 0)),
        ),
        compiler_params=pltpu.CompilerParams(
            dimension_semantics=("parallel",)),  # batch tiles across TCs on v7x
    )(x_in, w_slab, b_slab)


def mda_reference(x, wi, bi, wm, bm, w1, b1, w2, b2):
    """Pure-JAX f32 reference mirroring the PyTorch module (eval mode)."""
    h0, hmid, hlast = HIDDEN_DIMS
    embs = [jnp.maximum(x[i] @ wi[i] + bi[i, 0], 0.0) for i in range(N)]
    h = jnp.concatenate(embs, axis=1)                       # (B, N*H0)
    h = h @ wm.reshape(N * h0, hmid) + bm[0]                # middle Linear
    h = jnp.maximum(h, 0.0)                                 # activation
    outs = []
    for i in range(N):
        z = jnp.maximum(h @ w1[i] + b1[i, 0], 0.0)          # final_layer.proj1 + ReLU
        outs.append(z @ w2[i] + b2[i, 0])                   # final_layer.proj2
    return jnp.stack(outs, axis=0)


def _uniform(key, shape, fan_in):
    bound = 1.0 / jnp.sqrt(jnp.float32(fan_in))
    return jax.random.uniform(key, shape, jnp.float32, -bound, bound)


if __name__ == "__main__":
    h0, hmid, hlast = HIDDEN_DIMS
    B = 256                                   # batched M: fills MXU rows, grid=(2,)
    key = jax.random.PRNGKey(0)
    keys = jax.random.split(key, 10)

    # inputs: N per-view features (RWR-like, in [0, 1]), stacked.
    x = jax.random.uniform(keys[0], (N, B, DIM_INPUT), jnp.float32)

    # deterministic parameter init (PyTorch-Linear-style uniform bounds).
    wi = _uniform(keys[1], (N, DIM_INPUT, h0), DIM_INPUT)
    bi = _uniform(keys[2], (N, 1, h0), DIM_INPUT)
    wm = _uniform(keys[3], (N, h0, hmid), N * h0)
    bm = _uniform(keys[4], (1, hmid), N * h0)
    w1 = _uniform(keys[5], (N, hmid, hlast), hmid)
    b1 = _uniform(keys[6], (N, 1, hlast), hmid)
    w2 = _uniform(keys[7], (N, hlast, DIM_INPUT), hlast)
    b2 = _uniform(keys[8], (N, 1, DIM_INPUT), hlast)

    # One-time (model-load-time) packing, hoisted out of the per-call path.
    w_slab, b_slab = pack_mda_params(wi, bi, wm, bm, w1, b1, w2, b2)
    w_slab, b_slab = jax.block_until_ready((w_slab, b_slab))

    # Lane-dense interface: relayout of the stacked (N, B, D) demo tensor happens
    # once here at setup, not around every forward call.
    x_cat = jnp.transpose(x, (1, 0, 2)).reshape(B, N * DIM_INPUT)

    out_cat = mda_forward(x_cat, w_slab, b_slab, block_m=128)
    out_cat = jax.block_until_ready(out_cat)

    ref = mda_reference(x, wi, bi, wm, bm, w1, b1, w2, b2)          # (N, B, D) f32
    ref_cat = jnp.transpose(ref, (1, 0, 2)).reshape(B, N * DIM_INPUT)

    assert out_cat.shape == (B, N * DIM_INPUT)
    # bf16 MXU operands vs pure-f32 reference -> relaxed tolerance.
    assert jnp.allclose(out_cat, ref_cat, atol=2e-2, rtol=2e-2), (
        "mismatch vs reference: max abs err = "
        f"{float(jnp.max(jnp.abs(out_cat - ref_cat))):.3e}")

    print("KERNEL_OK")
</pallas_src>

<mosaic_0001>
module attributes {stable_mosaic.version = 11 : i64} {
  func.func @mda_kernel(%arg0: i32, %arg1: memref<128x192xbf16, #tpu.memory_space<vmem>>, %arg2: memref<4x192x192xbf16, #tpu.memory_space<vmem>>, %arg3: memref<4x192xf32, #tpu.memory_space<vmem>>, %arg4: memref<128x192xf32, #tpu.memory_space<vmem>>) attributes {dimension_semantics = [#tpu.dimension_semantics<parallel>], iteration_bounds = array<i64: 2>, scalar_prefetch = 0 : i64, scratch_operands = 0 : i64, tpu.core_type = #tpu.core_type<tc>, window_params = [{transform_indices = @transform_0, window_bounds = array<i64: 128, 192>}, {pipeline_mode = #tpu.pipeline_mode<synchronous>, transform_indices = @transform_1, window_bounds = array<i64: 4, 192, 192>}, {pipeline_mode = #tpu.pipeline_mode<synchronous>, transform_indices = @transform_2, window_bounds = array<i64: 4, 192>}, {transform_indices = @transform_3, window_bounds = array<i64: 128, 192>}]} {
    %c0 = arith.constant 0 : index
    %c0_0 = arith.constant 0 : index
    %0 = vector.load %arg1[%c0, %c0_0] : memref<128x192xbf16, #tpu.memory_space<vmem>>, vector<128x192xbf16>
    %c0_1 = arith.constant 0 : index
    %c0_2 = arith.constant 0 : index
    %1 = vector.load %arg3[%c0_1, %c0_2] : memref<4x192xf32, #tpu.memory_space<vmem>>, vector<4x192xf32>
    %c0_3 = arith.constant 0 : index
    %c0_4 = arith.constant 0 : index
    %c0_5 = arith.constant 0 : index
    %2 = vector.load %arg2[%c0_3, %c0_4, %c0_5] : memref<4x192x192xbf16, #tpu.memory_space<vmem>>, vector<1x192x192xbf16>
    %3 = vector.shape_cast %2 : vector<1x192x192xbf16> to vector<192x192xbf16>
    %cst = arith.constant dense<0.000000e+00> : vector<128x192xf32>
    %4 = tpu.matmul %0, %3, %cst {dimension_numbers = #tpu.dot_dimension_numbers<[1], [0], [0], [1], [0, 0, 1, 1], [], []>} : vector<128x192xbf16>, vector<192x192xbf16>, vector<128x192xf32> -> vector<128x192xf32>
    %5 = vector.extract_strided_slice %1 {offsets = [0, 0], sizes = [1, 192], strides = [1, 1]} : vector<4x192xf32> to vector<1x192xf32>
    %6 = vector.broadcast %5 : vector<1x192xf32> to vector<128x192xf32>
    %7 = arith.addf %4, %6 : vector<128x192xf32>
    %cst_6 = arith.constant 0.000000e+00 : f32
    %8 = vector.broadcast %cst_6 : f32 to vector<128x192xf32>
    %9 = arith.maximumf %7, %8 : vector<128x192xf32>
    %10 = arith.truncf %9 : vector<128x192xf32> to vector<128x192xbf16>
    %c1 = arith.constant 1 : index
    %c0_7 = arith.constant 0 : index
    %c0_8 = arith.constant 0 : index
    %11 = vector.load %arg2[%c1, %c0_7, %c0_8] : memref<4x192x192xbf16, #tpu.memory_space<vmem>>, vector<1x192x192xbf16>
    %12 = vector.shape_cast %11 : vector<1x192x192xbf16> to vector<192x192xbf16>
    %cst_9 = arith.constant dense<0.000000e+00> : vector<128x192xf32>
    %13 = tpu.matmul %10, %12, %cst_9 {dimension_numbers = #tpu.dot_dimension_numbers<[1], [0], [0], [1], [0, 0, 1, 1], [], []>} : vector<128x192xbf16>, vector<192x192xbf16>, vector<128x192xf32> -> vector<128x192xf32>
    %14 = vector.extract_strided_slice %1 {offsets = [1, 0], sizes = [1, 192], strides = [1, 1]} : vector<4x192xf32> to vector<1x192xf32>
    %15 = vector.broadcast %14 : vector<1x192xf32> to vector<128x192xf32>
    %16 = arith.addf %13, %15 : vector<128x192xf32>
    %cst_10 = arith.constant 0.000000e+00 : f32
    %17 = vector.broadcast %cst_10 : f32 to vector<128x192xf32>
    %18 = arith.maximumf %16, %17 : vector<128x192xf32>
    %19 = arith.truncf %18 : vector<128x192xf32> to vector<128x192xbf16>
    %c2 = arith.constant 2 : index
    %c0_11 = arith.constant 0 : index
    %c0_12 = arith.constant 0 : index
    %20 = vector.load %arg2[%c2, %c0_11, %c0_12] : memref<4x192x192xbf16, #tpu.memory_space<vmem>>, vector<1x192x192xbf16>
    %21 = vector.shape_cast %20 : vector<1x192x192xbf16> to vector<192x192xbf16>
    %cst_13 = arith.constant dense<0.000000e+00> : vector<128x192xf32>
    %22 = tpu.matmul %19, %21, %cst_13 {dimension_numbers = #tpu.dot_dimension_numbers<[1], [0], [0], [1], [0, 0, 1, 1], [], []>} : vector<128x192xbf16>, vector<192x192xbf16>, vector<128x192xf32> -> vector<128x192xf32>
    %23 = vector.extract_strided_slice %1 {offsets = [2, 0], sizes = [1, 192], strides = [1, 1]} : vector<4x192xf32> to vector<1x192xf32>
    %24 = vector.broadcast %23 : vector<1x192xf32> to vector<128x192xf32>
    %25 = arith.addf %22, %24 : vector<128x192xf32>
    %cst_14 = arith.constant 0.000000e+00 : f32
    %26 = vector.broadcast %cst_14 : f32 to vector<128x192xf32>
    %27 = arith.maximumf %25, %26 : vector<128x192xf32>
    %28 = arith.truncf %27 : vector<128x192xf32> to vector<128x192xbf16>
    %c3 = arith.constant 3 : index
    %c0_15 = arith.constant 0 : index
    %c0_16 = arith.constant 0 : index
    %29 = vector.load %arg2[%c3, %c0_15, %c0_16] : memref<4x192x192xbf16, #tpu.memory_space<vmem>>, vector<1x192x192xbf16>
    %30 = vector.shape_cast %29 : vector<1x192x192xbf16> to vector<192x192xbf16>
    %cst_17 = arith.constant dense<0.000000e+00> : vector<128x192xf32>
    %31 = tpu.matmul %28, %30, %cst_17 {dimension_numbers = #tpu.dot_dimension_numbers<[1], [0], [0], [1], [0, 0, 1, 1], [], []>} : vector<128x192xbf16>, vector<192x192xbf16>, vector<128x192xf32> -> vector<128x192xf32>
    %32 = vector.extract_strided_slice %1 {offsets = [3, 0], sizes = [1, 192], strides = [1, 1]} : vector<4x192xf32> to vector<1x192xf32>
    %33 = vector.broadcast %32 : vector<1x192xf32> to vector<128x192xf32>
    %34 = arith.addf %31, %33 : vector<128x192xf32>
    %c0_18 = arith.constant 0 : index
    %c0_19 = arith.constant 0 : index
    %35 = vector.load %arg4[%c0_18, %c0_19] : memref<128x192xf32, #tpu.memory_space<vmem>>, vector<128x192xf32>
    tpu.vector_store %arg4[%c0_18, %c0_19], %34 {strides = array<i32>} : memref<128x192xf32, #tpu.memory_space<vmem>>, vector<128x192xf32>,
    return
  }
  func.func @transform_0(%arg0: i32) -> (i32, i32) {
    %c0_i32 = arith.constant 0 : i32
    %c0_i32_0 = arith.constant 0 : i32
    return %arg0, %c0_i32 : i32, i32
  }
  func.func @transform_1(%arg0: i32) -> (i32, i32, i32) {
    %c0_i32 = arith.constant 0 : i32
    %c0_i32_0 = arith.constant 0 : i32
    %c0_i32_1 = arith.constant 0 : i32
    %c0_i32_2 = arith.constant 0 : i32
    return %c0_i32, %c0_i32_0, %c0_i32_1 : i32, i32, i32
  }
  func.func @transform_2(%arg0: i32) -> (i32, i32) {
    %c0_i32 = arith.constant 0 : i32
    %c0_i32_0 = arith.constant 0 : i32
    %c0_i32_1 = arith.constant 0 : i32
    return %c0_i32, %c0_i32_0 : i32, i32
  }
  func.func @transform_3(%arg0: i32) -> (i32, i32) {
    %c0_i32 = arith.constant 0 : i32
    %c0_i32_0 = arith.constant 0 : i32
    return %arg0, %c0_i32 : i32, i32
  }
}

</mosaic_0001>

<bundles_post_ra>
// kernel: mda_forward.1
= control target key start
LH: loop header
LB: loop body
LE: loop exit
PB: predicated region body
PF: predicated region fallthrough
CT: control target
= control target key end

     0   :  { %s2139_s12 = smov 0   ;;  %s2715_s0 = inlined_call_operand.vmem [shape: bf16[256,192], index: 0, kind: input, shape index: {}]   ;;  %s2716_s1 = inlined_call_operand.vmem [shape: bf16[4,192,192], index: 1, kind: input, shape index: {}]   ;;  %s2717_s2 = inlined_call_operand.vmem [shape: f32[4,192], index: 2, kind: input, shape index: {}]   ;;  %s2718_s3 = inlined_call_operand.vmem [shape: f32[256,192], index: 3, kind: output, shape index: {}]  }
   0x1 LB: > { %s1704_s13 = sadd.s32 4294967295, %s2117_s12   ;;  %p1708_p0 = scmp.ge.s32.totalorder %s2117_s12, 1  ;;  %s2117_s12 = sphi %s2139_s12, %s13_s12  }
   0x2   : > { %p139_p1 = scmp.lt.s32.totalorder %s2117_s12, 3 }
   0x4   : > { %p140_p2 = pnand %p1708_p0, %p139_p1 }
   0x5   : > { %s1709_s16 = sshll.u32 (!%p140_p2), %s1704_s13, 4 }
   0x6   : > { %143 = sbr.rel (%p140_p2) target bundleno = 936 (0x3a8), region = 32  ;;  %p166_p3 = scmp.lt.s32.totalorder (!%p140_p2), %s1709_s16, 31 }
   0xb   : > { %v1943_v0 = vld [vmem:[%s2716_s1 + $0x74] ss:$8 sps:$4 sm:$0xff]   ;;  %v1945_v1 = vld [vmem:[%s2716_s1 + $0x70] ss:$8 sps:$4 sm:$0xff]   ;;  %v1946_v2 = vld [vmem:[%s2716_s1 + $0x64] ss:$8 sps:$4 sm:$0xff]  }
   0xc   : > { %457 = vmatprep.subr.bf16.mxu0 %v1943_v0  ;;  %v1948_v3 = vld [vmem:[%s2716_s1 + $0x60] ss:$8 sps:$4 sm:$0xff]   ;;  %v1949_v4 = vld [vmem:[%s2716_s1 + $0x54] ss:$8 sps:$4 sm:$0xff]   ;;  %v1951_v5 = vld [vmem:[%s2716_s1 + $0x50] ss:$8 sps:$4 sm:$0xff]  }
   0xd   : > { %458 = vmatpush1.bf16.msra.mxu0 %v1945_v1  ;;  %s2720_s16 = smov (!%p166_p3, %s1709_s16), 31  ;;  %v1952_v6 = vld [vmem:[%s2716_s1 + $0x44] ss:$8 sps:$4 sm:$0xff]   ;;  %v1954_v7 = vld [vmem:[%s2716_s1 + $0x40] ss:$8 sps:$4 sm:$0xff]   ;;  %vm432_vm0 = vcmask 523264  }
   0xe   : > { %459 = vmatprep.subr.bf16.mxu0 %v1946_v2  ;;  %s1933_s4 = sshll.u32 %s2720_s16, 3  ;;  %v1955_v8 = vld [vmem:[%s2716_s1 + $0x34] ss:$8 sps:$4 sm:$0xff]   ;;  %v1957_v9 = vld [vmem:[%s2716_s1 + $0x30] ss:$8 sps:$4 sm:$0xff]   ;;  %s1934_s14 = sshll.u32 %s2720_s16, 4 }
   0xf   : > { %s2180_s9 = scalar_lea.vmem %s2715_s0, %s1933_s4  ;;  %v1958_v10 = vld [vmem:[%s2716_s1 + $0x24] ss:$8 sps:$4 sm:$0xff]   ;;  %v1960_v12 = vld [vmem:[%s2716_s1 + $0x20] ss:$8 sps:$4 sm:$0xff]   ;;  %v1961_v13 = vld [vmem:[%s2716_s1 + $0x14] ss:$8 sps:$4 sm:$0xff]   ;;  %s2630_s18 = scalar_lea.vmem %s2718_s3, %s1934_s14 }
  0x10   : > { %v1981_v11 = vld [vmem:[%s2180_s9 + $0x4] ss:$8 sps:$4 sm:$0xff]   ;;  %v1963_v14 = vld [vmem:[%s2716_s1 + $0x10] ss:$8 sps:$4 sm:$0xff]   ;;  %v1966_v16 = vld [vmem:[%s2716_s1] ss:$8 sps:$4 sm:$0xff]  }
  0x11   : > { %460 = vmatpush1.bf16.msra.mxu0 %v1948_v3  ;;  %1755 = vmatprep.mubr.msk.bf16.mxu0 %vm432_vm0, %v1981_v11  ;;  %v1964_v15 = vld [vmem:[%s2716_s1 + $0x4] ss:$8 sps:$4 sm:$0xff]   ;;  %v1967_v17 = vld [vmem:[%s2716_s1 + $0xb4] ss:$8 sps:$4 sm:$0xff]   ;;  %v2005_v19 = vld [vmem:[%s2716_s1 + $0x130] ss:$8 sps:$4 sm:$0xff]  }
  0x12   : > { %461 = vmatprep.subr.bf16.mxu0 %v1949_v4  ;;  %v2003_v18 = vld [vmem:[%s2716_s1 + $0x134] ss:$8 sps:$4 sm:$0xff]   ;;  %v2006_v20 = vld [vmem:[%s2716_s1 + $0x124] ss:$8 sps:$4 sm:$0xff]   ;;  %v2008_v21 = vld [vmem:[%s2716_s1 + $0x120] ss:$8 sps:$4 sm:$0xff]  }
  0x13   : > { %805 = vmatprep.subr.bf16.mxu1 %v2003_v18  ;;  %v1969_v22 = vld [vmem:[%s2716_s1 + $0xb0] ss:$8 sps:$4 sm:$0xff]   ;;  %v2009_v23 = vld [vmem:[%s2716_s1 + $0x114] ss:$8 sps:$4 sm:$0xff]   ;;  %v1970_v24 = vld [vmem:[%s2716_s1 + $0xa4] ss:$8 sps:$4 sm:$0xff]  }
  0x14   : > { %806 = vmatpush1.bf16.msra.mxu1 %v2005_v19  ;;  %v2011_v25 = vld [vmem:[%s2716_s1 + $0x110] ss:$8 sps:$4 sm:$0xff]   ;;  %v1972_v26 = vld [vmem:[%s2716_s1 + $0xa0] ss:$8 sps:$4 sm:$0xff]   ;;  %v2012_v27 = vld [vmem:[%s2716_s1 + $0x104] ss:$8 sps:$4 sm:$0xff]  }
  0x15   : > { %462 = vmatpush1.bf16.msra.mxu0 %v1951_v5  ;;  %807 = vmatprep.subr.bf16.mxu1 %v2006_v20  ;;  %v1973_v28 = vld [vmem:[%s2716_s1 + $0x94] ss:$8 sps:$4 sm:$0xff]   ;;  %v1975_v29 = vld [vmem:[%s2716_s1 + $0x90] ss:$8 sps:$4 sm:$0xff]   ;;  %v1976_v30 = vld [vmem:[%s2716_s1 + $0x84] ss:$8 sps:$4 sm:$0xff]   ;;  %v222_v20 = vlaneseq }
  0x16   : > { %463 = vmatprep.subr.bf16.mxu0 %v1952_v6  ;;  %v2014_v31 = vld [vmem:[%s2716_s1 + $0x100] ss:$8 sps:$4 sm:$0xff]   ;;  %v2015_v32 = vld [vmem:[%s2716_s1 + $0xf4] ss:$8 sps:$4 sm:$0xff]   ;;  %v2017_v33 = vld [vmem:[%s2716_s1 + $0xf0] ss:$8 sps:$4 sm:$0xff]  }
  0x17   : > { %v1978_v34 = vld [vmem:[%s2716_s1 + $0x80] ss:$8 sps:$4 sm:$0xff]   ;;  %v2018_v35 = vld [vmem:[%s2716_s1 + $0xe4] ss:$8 sps:$4 sm:$0xff]   ;;  %v1982_v38 = vld [vmem:[%s2180_s9 + $0x14] ss:$8 sps:$4 sm:$0xff]  }
  0x18   : > { %808 = vmatpush1.bf16.msra.mxu1 %v2008_v21  ;;  %v1979_v36 = vld [vmem:[%s2180_s9] ss:$8 sps:$4 sm:$0xff]   ;;  %v2021_v39 = vld [vmem:[%s2716_s1 + $0xd4] ss:$8 sps:$4 sm:$0xff]   ;;  %v2023_v40 = vld [vmem:[%s2716_s1 + $0xd0] ss:$8 sps:$4 sm:$0xff]  }
  0x19   : > { %464 = vmatpush1.bf16.msra.mxu0 %v1954_v7  ;;  %809 = vmatprep.subr.bf16.mxu1 %v2009_v23  ;;  %v2020_v37 = vld [vmem:[%s2716_s1 + $0xe0] ss:$8 sps:$4 sm:$0xff]   ;;  %v2024_v41 = vld [vmem:[%s2716_s1 + $0xc4] ss:$8 sps:$4 sm:$0xff]   ;;  %v1984_v42 = vld [vmem:[%s2180_s9 + $0x10] ss:$8 sps:$4 sm:$0xff]  }
  0x1a   : > { %465 = vmatprep.subr.bf16.mxu0 %v1955_v8  ;;  %v2026_v43 = vld [vmem:[%s2716_s1 + $0xc0] ss:$8 sps:$4 sm:$0xff]   ;;  %v1985_v44 = vld [vmem:[%s2180_s9 + $0x24] ss:$8 sps:$4 sm:$0xff]   ;;  %v2027_v45 = vld [vmem:[%s2716_s1 + $0x174] ss:$8 sps:$4 sm:$0xff]  }
  0x1b   : > { %v2029_v46 = vld [vmem:[%s2716_s1 + $0x170] ss:$8 sps:$4 sm:$0xff]   ;;  %v1987_v47 = vld [vmem:[%s2180_s9 + $0x20] ss:$8 sps:$4 sm:$0xff]   ;;  %v1988_v48 = vld [vmem:[%s2180_s9 + $0x34] ss:$8 sps:$4 sm:$0xff]  }
  0x1c   : > { %810 = vmatpush1.bf16.msra.mxu1 %v2011_v25  ;;  %v1990_v49 = vld [vmem:[%s2180_s9 + $0x30] ss:$8 sps:$4 sm:$0xff]   ;;  %v1991_v50 = vld [vmem:[%s2180_s9 + $0x44] ss:$8 sps:$4 sm:$0xff]   ;;  %v1993_v51 = vld [vmem:[%s2180_s9 + $0x40] ss:$8 sps:$4 sm:$0xff]  }
  0x1d   : > { %466 = vmatpush1.bf16.msra.mxu0 %v1957_v9  ;;  %811 = vmatprep.subr.bf16.mxu1 %v2012_v27  ;;  %v1994_v52 = vld [vmem:[%s2180_s9 + $0x54] ss:$8 sps:$4 sm:$0xff]   ;;  %v1996_v53 = vld [vmem:[%s2180_s9 + $0x50] ss:$8 sps:$4 sm:$0xff]   ;;  %v1997_v54 = vld [vmem:[%s2180_s9 + $0x64] ss:$8 sps:$4 sm:$0xff]  }
  0x1e   : > { %467 = vmatprep.subr.bf16.mxu0 %v1958_v10  ;;  %v1999_v55 = vld [vmem:[%s2180_s9 + $0x60] ss:$8 sps:$4 sm:$0xff]   ;;  %v2000_v56 = vld [vmem:[%s2180_s9 + $0x74] ss:$8 sps:$4 sm:$0xff]   ;;  %v2002_v57 = vld [vmem:[%s2180_s9 + $0x70] ss:$8 sps:$4 sm:$0xff]  }
  0x1f   : > { %v2030_v58 = vld [vmem:[%s2716_s1 + $0x164] ss:$8 sps:$4 sm:$0xff]   ;;  %v2032_v59 = vld [vmem:[%s2716_s1 + $0x160] ss:$8 sps:$4 sm:$0xff]   ;;  %v2033_v60 = vld [vmem:[%s2716_s1 + $0x154] ss:$8 sps:$4 sm:$0xff]  }
  0x20   : > { %812 = vmatpush1.bf16.msra.mxu1 %v2014_v31  ;;  %v2035_v61 = vld [vmem:[%s2716_s1 + $0x150] ss:$8 sps:$4 sm:$0xff]   ;;  %v2036_v62 = vld [vmem:[%s2716_s1 + $0x144] ss:$8 sps:$4 sm:$0xff]   ;;  %v2038_v63 = vld [vmem:[%s2716_s1 + $0x140] ss:$8 sps:$4 sm:$0xff]  }
  0x21   : > { %468 = vmatpush1.bf16.msra.mxu0 %v1960_v12  ;;  %813 = vmatprep.subr.bf16.mxu1 %v2015_v32  ;;  %v2039_v0 = vld [vmem:[%s2716_s1 + $0x1f0] ss:$8 sps:$4 sm:$0xff]   ;;  %v2041_v1 = vld [vmem:[%s2716_s1 + $0x1f4] ss:$8 sps:$4 sm:$0xff]   ;;  %v2044_v2 = vld [vmem:[%s2716_s1 + $0x1e4] ss:$8 sps:$4 sm:$0xff]  }
  0x22   : > { %469 = vmatprep.subr.bf16.mxu0 %v1961_v13  ;;  %v2042_v3 = vld [vmem:[%s2716_s1 + $0x1e0] ss:$8 sps:$4 sm:$0xff]   ;;  %v2047_v4 = vld [vmem:[%s2716_s1 + $0x1d4] ss:$8 sps:$4 sm:$0xff]   ;;  %v2045_v5 = vld [vmem:[%s2716_s1 + $0x1d0] ss:$8 sps:$4 sm:$0xff]  }
  0x23   : > { %v2050_v6 = vld [vmem:[%s2716_s1 + $0x1c4] ss:$8 sps:$4 sm:$0xff]   ;;  %v2048_v7 = vld [vmem:[%s2716_s1 + $0x1c0] ss:$8 sps:$4 sm:$0xff]   ;;  %v2053_v8 = vld [vmem:[%s2716_s1 + $0x1b4] ss:$8 sps:$4 sm:$0xff]  }
  0x24   : > { %814 = vmatpush1.bf16.msra.mxu1 %v2017_v33  ;;  %v2051_v9 = vld [vmem:[%s2716_s1 + $0x1b0] ss:$8 sps:$4 sm:$0xff]   ;;  %v2056_v10 = vld [vmem:[%s2716_s1 + $0x1a4] ss:$8 sps:$4 sm:$0xff]   ;;  %v2054_v11 = vld [vmem:[%s2716_s1 + $0x1a0] ss:$8 sps:$4 sm:$0xff]  }
  0x25   : > { %470 = vmatpush1.bf16.msra.mxu0 %v1963_v14  ;;  %815 = vmatprep.subr.bf16.mxu1 %v2018_v35  ;;  %v2059_v12 = vld [vmem:[%s2716_s1 + $0x194] ss:$8 sps:$4 sm:$0xff]   ;;  %v2057_v13 = vld [vmem:[%s2716_s1 + $0x190] ss:$8 sps:$4 sm:$0xff]   ;;  %v2062_v14 = vld [vmem:[%s2716_s1 + $0x184] ss:$8 sps:$4 sm:$0xff]  }
  0x26   : > { %471 = vmatprep.subr.bf16.mxu0 %v1964_v15  ;;  %v2060_v15 = vld [vmem:[%s2716_s1 + $0x180] ss:$8 sps:$4 sm:$0xff]   ;;  %v2068_v18 = vld [vmem:[%s2716_s1 + $0x224] ss:$8 sps:$4 sm:$0xff]   ;;  %v2383_v21 = vshrl.u32 %v222_v20, 7 }
  0x27   : > { %v2066_v19 = vld [vmem:[%s2716_s1 + $0x220] ss:$8 sps:$4 sm:$0xff]  }
  0x28   : > { %816 = vmatpush1.bf16.msra.mxu1 %v2020_v37  ;;  %v224_v23 = vsub.s32 0, %v2383_v21 }
  0x29   : > { %472 = vmatpush1.bf16.msra.mxu0 %v1966_v16  ;;  %817 = vmatprep.subr.bf16.mxu1 %v2021_v39  ;;  %v2065_v16 = vld [vmem:[%s2716_s1 + $0x234] ss:$8 sps:$4 sm:$0xff]  }
  0x2a   : > { %481 = vmatprep.subr.bf16.mxu0 %v1967_v17  ;;  %v2063_v17 = vld [vmem:[%s2716_s1 + $0x230] ss:$8 sps:$4 sm:$0xff]  }
  0x2c   : > { %818 = vmatpush1.bf16.msra.mxu1 %v2023_v40 }
  0x2d   : > { %482 = vmatpush2.bf16.msra.mxu0 %v1969_v22  ;;  %819 = vmatprep.subr.bf16.mxu1 %v2024_v41  ;;  %v228_v22 = vsub.s32 4, %v2383_v21 }
  0x2e   : > { %483 = vmatprep.subr.bf16.mxu0 %v1970_v24  ;;  %v2390_v24 = vld [vmem:[%s2717_s2] sm:$0xff] }
  0x2f   : > { %v229_v25 = vrot.slane %v2390_v24, %v228_v22 }
  0x30   : > { %820 = vmatpush1.bf16.msra.mxu1 %v2026_v43 }
  0x31   : > { %484 = vmatpush2.bf16.msra.mxu0 %v1972_v26  ;;  %829 = vmatprep.subr.bf16.mxu1 %v2027_v45  ;;  %v225_v26 = vrot.slane %v2390_v24, %v224_v23 }
  0x32   : > { %485 = vmatprep.subr.bf16.mxu0 %v1973_v28  ;;  %v2394_v28 = vrot.slane %v229_v25, %v224_v23 }
  0x34   : > { %830 = vmatpush2.bf16.msra.mxu1 %v2029_v46 }
  0x35   : > { %486 = vmatpush2.bf16.msra.mxu0 %v1975_v29  ;;  %831 = vmatprep.subr.bf16.mxu1 %v2030_v58  ;;  %v2396_v29 = vrot.slane %v225_v26, %v224_v23 }
  0x36   : > { %487 = vmatprep.subr.bf16.mxu0 %v1976_v30 }
  0x38   : > { %832 = vmatpush2.bf16.msra.mxu1 %v2032_v59 }
  0x39   : > { %488 = vmatpush2.bf16.msra.mxu0 %v1978_v34  ;;  %833 = vmatprep.subr.bf16.mxu1 %v2033_v60 }
  0x3a   : > { %1153 = vmatprep.subr.bf16.mxu0 %v2041_v1 }
  0x3c   : > { %490 = vmatmul.mubr.bf16.vlgmr.msra.gmra.mxu0 %v1979_v36  ;;  %834 = vmatpush2.bf16.msra.mxu1 %v2035_v61 }
  0x3d   : > { %1756 = vmatprep.mubr.msk.bf16.mxu0 %vm432_vm0, %v1982_v38  ;;  %835 = vmatprep.subr.bf16.mxu1 %v2036_v62 }
  0x3e   : > { %1154 = vmatpush1.bf16.msra.mxu0 %v2039_v0 }
  0x3f   : > { %1155 = vmatprep.subr.bf16.mxu0 %v2044_v2 }
  0x40   : > { %836 = vmatpush2.bf16.msra.mxu1 %v2038_v63 }
  0x42   : > { %1156 = vmatpush1.bf16.msra.mxu0 %v2042_v3 }
  0x43   : > { %1157 = vmatprep.subr.bf16.mxu0 %v2047_v4 }
  0x44   : > { %500 = vmatmul.mubr.bf16.gmra.mxu0 %v1984_v42 }
  0x45   : > { %1757 = vmatprep.mubr.msk.bf16.mxu0 %vm432_vm0, %v1985_v44 }
  0x46   : > { %1158 = vmatpush1.bf16.msra.mxu0 %v2045_v5 }
  0x47   : > { %1159 = vmatprep.subr.bf16.mxu0 %v2050_v6 }
  0x4a   : > { %1160 = vmatpush1.bf16.msra.mxu0 %v2048_v7 }
  0x4b   : > { %1161 = vmatprep.subr.bf16.mxu0 %v2053_v8 }
  0x4c   : > { %510 = vmatmul.mubr.bf16.gmra.mxu0 %v1987_v47 }
  0x4d   : > { %1758 = vmatprep.mubr.msk.bf16.mxu0 %vm432_vm0, %v1988_v48 }
  0x4e   : > { %1162 = vmatpush1.bf16.msra.mxu0 %v2051_v9 }
  0x4f   : > { %1163 = vmatprep.subr.bf16.mxu0 %v2056_v10 }
  0x52   : > { %1164 = vmatpush1.bf16.msra.mxu0 %v2054_v11 }
  0x53   : > { %1165 = vmatprep.subr.bf16.mxu0 %v2059_v12 }
  0x54   : > { %520 = vmatmul.mubr.bf16.gmra.mxu0 %v1990_v49 }
  0x55   : > { %1759 = vmatprep.mubr.msk.bf16.mxu0 %vm432_vm0, %v1991_v50 }
  0x56   : > { %1166 = vmatpush1.bf16.msra.mxu0 %v2057_v13 }
  0x57   : > { %1167 = vmatprep.subr.bf16.mxu0 %v2062_v14 }
  0x5a   : > { %1168 = vmatpush1.bf16.msra.mxu0 %v2060_v15 }
  0x5b   : > { %1177 = vmatprep.subr.bf16.mxu0 %v2065_v16 }
  0x5c   : > { %530 = vmatmul.mubr.bf16.gmra.mxu0 %v1993_v51 }
  0x5d   : > { %1760 = vmatprep.mubr.msk.bf16.mxu0 %vm432_vm0, %v1994_v52 }
  0x5e   : > { %1178 = vmatpush2.bf16.msra.mxu0 %v2063_v17 }
  0x5f   : > { %1179 = vmatprep.subr.bf16.mxu0 %v2068_v18 }
  0x62   : > { %1180 = vmatpush2.bf16.msra.mxu0 %v2066_v19 }
  0x64   : > { %540 = vmatmul.mubr.bf16.gmra.mxu0 %v1996_v53 }
  0x65   : > { %1761 = vmatprep.mubr.msk.bf16.mxu0 %vm432_vm0, %v1997_v54 }
  0x6c   : > { %550 = vmatmul.mubr.bf16.gmra.mxu0 %v1999_v55 }
  0x6d   : > { %1762 = vmatprep.mubr.msk.bf16.mxu0 %vm432_vm0, %v2000_v56 }
  0x74   : > { %560 = vmatmul.mubr.bf16.gmra.mxu0 %v2002_v57 }
  0xfc   : > { %v491_v27 = vpop.f32.mrf.mxu0 }
  0xfd   : > { %v492_v34 = vadd.f32 %v491_v27, %v2396_v29 }
  0xfe   : > { %v493_v30 = vpop.f32.mrf.mxu0 }
  0xff   : > { %v494_v32 = vadd.f32 %v493_v30, %v2394_v28  ;;  %v570_v41 = vmax.f32 %v492_v34, 0.0 }
 0x100   : > { %v495_v31 = vpop.f32.mrf.mxu0 }
 0x101   : > { %v496_v33 = vadd.f32 %v495_v31, %v2396_v29  ;;  %v571_v39 = vmax.f32 %v494_v32, 0.0 }
 0x102   : > { %v497_v35 = vpop.f32.mrf.mxu0 }
 0x103   : > { %v498_v36 = vadd.f32 %v497_v35, %v2394_v28  ;;  %v572_v37 = vmax.f32 %v496_v33, 0.0 }
 0x104   : > { %v501_v38 = vpop.f32.mrf.mxu0 }
 0x105   : > { %v573_v40 = vmax.f32 %v498_v36, 0.0  ;;  %v602_v44 = vpack.c.bf16 %v572_v37, %v570_v41  ;;  %v502_v48 = vadd.f32 %v501_v38, %v2396_v29 }
 0x106   : > { %v503_v42 = vpop.f32.mrf.mxu0 }
 0x107   : > { %v603_v43 = vpack.c.bf16 %v573_v40, %v571_v39  ;;  %v504_v46 = vadd.f32 %v503_v42, %v2394_v28  ;;  %v574_v55 = vmax.f32 %v502_v48, 0.0 }
 0x108   : > { %v505_v45 = vpop.f32.mrf.mxu0 }
 0x109   : > { %v506_v47 = vadd.f32 %v505_v45, %v2396_v29  ;;  %1811 = vmatprep.mubr.msk.bf16.mxu1 %vm432_vm0, %v603_v43  ;;  %v575_v53 = vmax.f32 %v504_v46, 0.0 }
 0x10a   : > { %v507_v49 = vpop.f32.mrf.mxu0  ;;  %838 = vmatmul.mubr.bf16.vlgmr.msra.gmra.mxu1 %v602_v44 }
 0x10b   : > { %v508_v50 = vadd.f32 %v507_v49, %v2394_v28  ;;  %v576_v51 = vmax.f32 %v506_v47, 0.0 }
 0x10c   : > { %v511_v52 = vpop.f32.mrf.mxu0 }
 0x10d   : > { %v577_v54 = vmax.f32 %v508_v50, 0.0  ;;  %v604_v58 = vpack.c.bf16 %v576_v51, %v574_v55  ;;  %v512_v62 = vadd.f32 %v511_v52, %v2396_v29 }
 0x10e   : > { %v513_v56 = vpop.f32.mrf.mxu0 }
 0x10f   : > { %v605_v57 = vpack.c.bf16 %v577_v54, %v575_v53  ;;  %v514_v60 = vadd.f32 %v513_v56, %v2394_v28  ;;  %v578_v5 = vmax.f32 %v512_v62, 0.0 }
 0x110   : > { %v515_v59 = vpop.f32.mrf.mxu0 }
 0x111   : > { %v516_v61 = vadd.f32 %v515_v59, %v2396_v29  ;;  %1812 = vmatprep.mubr.msk.bf16.mxu1 %vm432_vm0, %v605_v57  ;;  %v579_v3 = vmax.f32 %v514_v60, 0.0 }
 0x112   : > { %v517_v63 = vpop.f32.mrf.mxu0  ;;  %848 = vmatmul.mubr.bf16.gmra.mxu1 %v604_v58 }
 0x113   : > { %v518_v0 = vadd.f32 %v517_v63, %v2394_v28  ;;  %v580_v1 = vmax.f32 %v516_v61, 0.0 }
 0x114   : > { %v521_v2 = vpop.f32.mrf.mxu0 }
 0x115   : > { %v581_v4 = vmax.f32 %v518_v0, 0.0  ;;  %v606_v8 = vpack.c.bf16 %v580_v1, %v578_v5  ;;  %v522_v12 = vadd.f32 %v521_v2, %v2396_v29 }
 0x116   : > { %v523_v6 = vpop.f32.mrf.mxu0 }
 0x117   : > { %v607_v7 = vpack.c.bf16 %v581_v4, %v579_v3  ;;  %v524_v10 = vadd.f32 %v523_v6, %v2394_v28  ;;  %v582_v19 = vmax.f32 %v522_v12, 0.0 }
 0x118   : > { %v525_v9 = vpop.f32.mrf.mxu0 }
 0x119   : > { %v526_v11 = vadd.f32 %v525_v9, %v2396_v29  ;;  %1813 = vmatprep.mubr.msk.bf16.mxu1 %vm432_vm0, %v607_v7  ;;  %v583_v17 = vmax.f32 %v524_v10, 0.0 }
 0x11a   : > { %v527_v13 = vpop.f32.mrf.mxu0  ;;  %858 = vmatmul.mubr.bf16.gmra.mxu1 %v606_v8 }
 0x11b   : > { %v528_v14 = vadd.f32 %v527_v13, %v2394_v28  ;;  %v584_v15 = vmax.f32 %v526_v11, 0.0 }
 0x11c   : > { %v531_v16 = vpop.f32.mrf.mxu0 }
 0x11d   : > { %v585_v18 = vmax.f32 %v528_v14, 0.0  ;;  %v608_v23 = vpack.c.bf16 %v584_v15, %v582_v19  ;;  %v532_v30 = vadd.f32 %v531_v16, %v2396_v29  ;;  %v2075_v19 = vld [vmem:[%s2716_s1 + $0x2b0] ss:$8 sps:$4 sm:$0xff]  }
 0x11e   : > { %v533_v20 = vpop.f32.mrf.mxu0 }
 0x11f   : > { %v609_v22 = vpack.c.bf16 %v585_v18, %v583_v17  ;;  %v534_v26 = vadd.f32 %v533_v20, %v2394_v28  ;;  %v586_v37 = vmax.f32 %v532_v30, 0.0  ;;  %v2071_v17 = vld [vmem:[%s2716_s1 + $0x214] ss:$8 sps:$4 sm:$0xff]   ;;  %v2072_v18 = vld [vmem:[%s2716_s1 + $0x200] ss:$8 sps:$4 sm:$0xff]  }
 0x120   : > { %v535_v25 = vpop.f32.mrf.mxu0  ;;  %1181 = vmatprep.subr.bf16.mxu0 %v2071_v17  ;;  %v2077_v20 = vld [vmem:[%s2716_s1 + $0x2b4] ss:$8 sps:$4 sm:$0xff]   ;;  %v2084_v30 = vld [vmem:[%s2716_s1 + $0x280] ss:$8 sps:$4 sm:$0xff]  }
 0x121   : > { %v536_v27 = vadd.f32 %v535_v25, %v2396_v29  ;;  %1814 = vmatprep.mubr.msk.bf16.mxu1 %vm432_vm0, %v609_v22  ;;  %v587_v35 = vmax.f32 %v534_v26, 0.0  ;;  %v2080_v22 = vld [vmem:[%s2716_s1 + $0x2a4] ss:$8 sps:$4 sm:$0xff]   ;;  %1501 = vmatprep.subr.bf16.mxu1 %v2077_v20  ;;  %v2083_v25 = vld [vmem:[%s2716_s1 + $0x294] ss:$8 sps:$4 sm:$0xff]  }
 0x122   : > { %v537_v31 = vpop.f32.mrf.mxu0  ;;  %868 = vmatmul.mubr.bf16.gmra.mxu1 %v608_v23  ;;  %v2078_v23 = vld [vmem:[%s2716_s1 + $0x2a0] ss:$8 sps:$4 sm:$0xff]   ;;  %v2081_v26 = vld [vmem:[%s2716_s1 + $0x290] ss:$8 sps:$4 sm:$0xff]  }
 0x123   : > { %v538_v32 = vadd.f32 %v537_v31, %v2394_v28  ;;  %v588_v33 = vmax.f32 %v536_v27, 0.0  ;;  %1502 = vmatpush1.bf16.msra.mxu1 %v2075_v19  ;;  %v2086_v27 = vld [vmem:[%s2716_s1 + $0x284] ss:$8 sps:$4 sm:$0xff]   ;;  %v2089_v31 = vld [vmem:[%s2716_s1 + $0x274] ss:$8 sps:$4 sm:$0xff]  }
 0x124   : > { %v541_v34 = vpop.f32.mrf.mxu0  ;;  %1503 = vmatprep.subr.bf16.mxu1 %v2080_v22 }
 0x125   : > { %v589_v36 = vmax.f32 %v538_v32, 0.0  ;;  %v610_v40 = vpack.c.bf16 %v588_v33, %v586_v37  ;;  %v542_v44 = vadd.f32 %v541_v34, %v2396_v29  ;;  %v2087_v32 = vld [vmem:[%s2716_s1 + $0x270] ss:$8 sps:$4 sm:$0xff]   ;;  %v2092_v33 = vld [vmem:[%s2716_s1 + $0x264] ss:$8 sps:$4 sm:$0xff]  }
 0x126   : > { %v543_v38 = vpop.f32.mrf.mxu0  ;;  %v2090_v34 = vld [vmem:[%s2716_s1 + $0x260] ss:$8 sps:$4 sm:$0xff]   ;;  %v2098_v37 = vld [vmem:[%s2716_s1 + $0x244] ss:$8 sps:$4 sm:$0xff]  }
 0x127   : > { %v611_v39 = vpack.c.bf16 %v589_v36, %v587_v35  ;;  %v544_v42 = vadd.f32 %v543_v38, %v2394_v28  ;;  %v590_v51 = vmax.f32 %v542_v44, 0.0  ;;  %1504 = vmatpush1.bf16.msra.mxu1 %v2078_v23  ;;  %v2095_v35 = vld [vmem:[%s2716_s1 + $0x254] ss:$8 sps:$4 sm:$0xff]   ;;  %v2093_v36 = vld [vmem:[%s2716_s1 + $0x250] ss:$8 sps:$4 sm:$0xff]   ;;  %v645_v44 = vsub.s32 1, %v2383_v21 }
 0x128   : > { %v545_v41 = vpop.f32.mrf.mxu0  ;;  %1505 = vmatprep.subr.bf16.mxu1 %v2083_v25  ;;  %v2096_v38 = vld [vmem:[%s2716_s1 + $0x240] ss:$8 sps:$4 sm:$0xff]  }
 0x129   : > { %v546_v43 = vadd.f32 %v545_v41, %v2396_v29  ;;  %1815 = vmatprep.mubr.msk.bf16.mxu1 %vm432_vm0, %v611_v39  ;;  %v591_v49 = vmax.f32 %v544_v42, 0.0  ;;  %v2101_v39 = vld [vmem:[%s2716_s1 + $0x2f4] ss:$8 sps:$4 sm:$0xff]   ;;  %v2104_v41 = vld [vmem:[%s2716_s1 + $0x2e4] ss:$8 sps:$4 sm:$0xff]  }
 0x12a   : > { %v547_v45 = vpop.f32.mrf.mxu0  ;;  %878 = vmatmul.mubr.bf16.gmra.mxu1 %v610_v40  ;;  %v2099_v40 = vld [vmem:[%s2716_s1 + $0x2f0] ss:$8 sps:$4 sm:$0xff]   ;;  %v2102_v42 = vld [vmem:[%s2716_s1 + $0x2e0] ss:$8 sps:$4 sm:$0xff]  }
 0x12b   : > { %v548_v46 = vadd.f32 %v547_v45, %v2394_v28  ;;  %v592_v47 = vmax.f32 %v546_v43, 0.0  ;;  %1506 = vmatpush1.bf16.msra.mxu1 %v2081_v26  ;;  %v649_v43 = vsub.s32 5, %v2383_v21 }
 0x12c   : > { %v551_v48 = vpop.f32.mrf.mxu0  ;;  %1507 = vmatprep.subr.bf16.mxu1 %v2086_v27 }
 0x12d   : > { %v593_v50 = vmax.f32 %v548_v46, 0.0  ;;  %v612_v54 = vpack.c.bf16 %v592_v47, %v590_v51  ;;  %v552_v58 = vadd.f32 %v551_v48, %v2396_v29  ;;  %v650_v45 = vrot.slane %v2390_v24, %v649_v43 }
 0x12e   : > { %v553_v52 = vpop.f32.mrf.mxu0  ;;  %v646_v46 = vrot.slane %v2390_v24, %v645_v44 }
 0x12f   : > { %v613_v53 = vpack.c.bf16 %v593_v50, %v591_v49  ;;  %v554_v56 = vadd.f32 %v553_v52, %v2394_v28  ;;  %v594_v1 = vmax.f32 %v552_v58, 0.0  ;;  %1508 = vmatpush1.bf16.msra.mxu1 %v2084_v30  ;;  %v2514_v48 = vrot.slane %v650_v45, %v645_v44 }
 0x130   : > { %v555_v55 = vpop.f32.mrf.mxu0  ;;  %1509 = vmatprep.subr.bf16.mxu1 %v2089_v31  ;;  %v2516_v49 = vrot.slane %v646_v46, %v645_v44 }
 0x131   : > { %v556_v57 = vadd.f32 %v555_v55, %v2396_v29  ;;  %1816 = vmatprep.mubr.msk.bf16.mxu1 %vm432_vm0, %v613_v53  ;;  %v595_v63 = vmax.f32 %v554_v56, 0.0 }
 0x132   : > { %v557_v59 = vpop.f32.mrf.mxu0  ;;  %888 = vmatmul.mubr.bf16.gmra.mxu1 %v612_v54 }
 0x133   : > { %v558_v60 = vadd.f32 %v557_v59, %v2394_v28  ;;  %v596_v61 = vmax.f32 %v556_v57, 0.0  ;;  %1510 = vmatpush1.bf16.msra.mxu1 %v2087_v32 }
 0x134   : > { %v561_v62 = vpop.f32.mrf.mxu0  ;;  %1511 = vmatprep.subr.bf16.mxu1 %v2092_v33 }
 0x135   : > { %v597_v0 = vmax.f32 %v558_v60, 0.0  ;;  %v614_v4 = vpack.c.bf16 %v596_v61, %v594_v1  ;;  %v562_v8 = vadd.f32 %v561_v62, %v2396_v29 }
 0x136   : > { %v563_v2 = vpop.f32.mrf.mxu0 }
 0x137   : > { %v615_v3 = vpack.c.bf16 %v597_v0, %v595_v63  ;;  %v564_v6 = vadd.f32 %v563_v2, %v2394_v28  ;;  %v598_v14 = vmax.f32 %v562_v8, 0.0  ;;  %1512 = vmatpush1.bf16.msra.mxu1 %v2090_v34 }
 0x138   : > { %v565_v5 = vpop.f32.mrf.mxu0  ;;  %1513 = vmatprep.subr.bf16.mxu1 %v2095_v35 }
 0x139   : > { %v566_v7 = vadd.f32 %v565_v5, %v2396_v29  ;;  %1817 = vmatprep.mubr.msk.bf16.mxu1 %vm432_vm0, %v615_v3  ;;  %v599_v12 = vmax.f32 %v564_v6, 0.0  ;;  %v2069_v29 = vld [vmem:[%s2716_s1 + $0x210] ss:$8 sps:$4 sm:$0xff]  }
 0x13a   : > { %v567_v9 = vpop.f32.mrf.mxu0  ;;  %898 = vmatmul.mubr.bf16.gmra.mxu1 %v614_v4  ;;  %1182 = vmatpush2.bf16.msra.mxu0 %v2069_v29 }
 0x13b   : > { %v568_v10 = vadd.f32 %v567_v9, %v2394_v28  ;;  %v600_v11 = vmax.f32 %v566_v7, 0.0  ;;  %v2074_v28 = vld [vmem:[%s2716_s1 + $0x204] ss:$8 sps:$4 sm:$0xff]   ;;  %1514 = vmatpush1.bf16.msra.mxu1 %v2093_v36 }
 0x13c   : > { %1183 = vmatprep.subr.bf16.mxu0 %v2074_v28  ;;  %1515 = vmatprep.subr.bf16.mxu1 %v2098_v37 }
 0x13d   : > { %v601_v13 = vmax.f32 %v568_v10, 0.0  ;;  %v616_v16 = vpack.c.bf16 %v600_v11, %v598_v14 }
 0x13e   : > { %1184 = vmatpush2.bf16.msra.mxu0 %v2072_v18 }
 0x13f   : > { %v617_v15 = vpack.c.bf16 %v601_v13, %v599_v12  ;;  %1516 = vmatpush1.bf16.msra.mxu1 %v2096_v38 }
 0x140   : > { %1525 = vmatprep.subr.bf16.mxu1 %v2101_v39 }
 0x141   : > { %1818 = vmatprep.mubr.msk.bf16.mxu1 %vm432_vm0, %v617_v15 }
 0x142   : > { %908 = vmatmul.mubr.bf16.gmra.mxu1 %v616_v16 }
 0x143   : > { %1526 = vmatpush2.bf16.msra.mxu1 %v2099_v40 }
 0x144   : > { %1527 = vmatprep.subr.bf16.mxu1 %v2104_v41 }
 0x147   : > { %1528 = vmatpush2.bf16.msra.mxu1 %v2102_v42 }
 0x1ca   : > { %v839_v47 = vpop.f32.mrf.mxu1 }
 0x1cb   : > { %v840_v54 = vadd.f32 %v839_v47, %v2516_v49 }
 0x1cc   : > { %v841_v50 = vpop.f32.mrf.mxu1 }
 0x1cd   : > { %v842_v52 = vadd.f32 %v841_v50, %v2514_v48  ;;  %v918_v61 = vmax.f32 %v840_v54, 0.0 }
 0x1ce   : > { %v843_v51 = vpop.f32.mrf.mxu1 }
 0x1cf   : > { %v844_v53 = vadd.f32 %v843_v51, %v2516_v49  ;;  %v919_v59 = vmax.f32 %v842_v52, 0.0 }
 0x1d0   : > { %v845_v55 = vpop.f32.mrf.mxu1 }
 0x1d1   : > { %v846_v56 = vadd.f32 %v845_v55, %v2514_v48  ;;  %v920_v57 = vmax.f32 %v844_v53, 0.0 }
 0x1d2   : > { %v849_v58 = vpop.f32.mrf.mxu1 }
 0x1d3   : > { %v921_v60 = vmax.f32 %v846_v56, 0.0  ;;  %v950_v0 = vpack.c.bf16 %v920_v57, %v918_v61  ;;  %v850_v4 = vadd.f32 %v849_v58, %v2516_v49 }
 0x1d4   : > { %v851_v62 = vpop.f32.mrf.mxu1 }
 0x1d5   : > { %v951_v63 = vpack.c.bf16 %v921_v60, %v919_v59  ;;  %v852_v2 = vadd.f32 %v851_v62, %v2514_v48  ;;  %v922_v11 = vmax.f32 %v850_v4, 0.0 }
 0x1d6   : > { %v853_v1 = vpop.f32.mrf.mxu1 }
 0x1d7   : > { %v854_v3 = vadd.f32 %v853_v1, %v2516_v49  ;;  %1867 = vmatprep.mubr.msk.bf16.mxu0 %vm432_vm0, %v951_v63  ;;  %v923_v9 = vmax.f32 %v852_v2, 0.0 }
 0x1d8   : > { %v855_v5 = vpop.f32.mrf.mxu1  ;;  %1186 = vmatmul.mubr.bf16.vlgmr.msra.gmra.mxu0 %v950_v0 }
 0x1d9   : > { %v856_v6 = vadd.f32 %v855_v5, %v2514_v48  ;;  %v924_v7 = vmax.f32 %v854_v3, 0.0 }
 0x1da   : > { %v859_v8 = vpop.f32.mrf.mxu1 }
 0x1db   : > { %v925_v10 = vmax.f32 %v856_v6, 0.0  ;;  %v952_v14 = vpack.c.bf16 %v924_v7, %v922_v11  ;;  %v860_v29 = vadd.f32 %v859_v8, %v2516_v49 }
 0x1dc   : > { %v861_v12 = vpop.f32.mrf.mxu1 }
 0x1dd   : > { %v953_v13 = vpack.c.bf16 %v925_v10, %v923_v9  ;;  %v862_v16 = vadd.f32 %v861_v12, %v2514_v48  ;;  %v926_v25 = vmax.f32 %v860_v29, 0.0 }
 0x1de   : > { %v863_v15 = vpop.f32.mrf.mxu1 }
 0x1df   : > { %v864_v17 = vadd.f32 %v863_v15, %v2516_v49  ;;  %1868 = vmatprep.mubr.msk.bf16.mxu0 %vm432_vm0, %v953_v13  ;;  %v927_v22 = vmax.f32 %v862_v16, 0.0 }
 0x1e0   : > { %v865_v28 = vpop.f32.mrf.mxu1  ;;  %1196 = vmatmul.mubr.bf16.gmra.mxu0 %v952_v14 }
 0x1e1   : > { %v866_v18 = vadd.f32 %v865_v28, %v2514_v48  ;;  %v928_v19 = vmax.f32 %v864_v17, 0.0 }
 0x1e2   : > { %v869_v20 = vpop.f32.mrf.mxu1 }
 0x1e3   : > { %v929_v23 = vmax.f32 %v866_v18, 0.0  ;;  %v954_v30 = vpack.c.bf16 %v928_v19, %v926_v25  ;;  %v870_v34 = vadd.f32 %v869_v20, %v2516_v49 }
 0x1e4   : > { %v871_v26 = vpop.f32.mrf.mxu1 }
 0x1e5   : > { %v955_v27 = vpack.c.bf16 %v929_v23, %v927_v22  ;;  %v872_v32 = vadd.f32 %v871_v26, %v2514_v48  ;;  %v930_v41 = vmax.f32 %v870_v34, 0.0 }
 0x1e6   : > { %v873_v31 = vpop.f32.mrf.mxu1 }
 0x1e7   : > { %v874_v33 = vadd.f32 %v873_v31, %v2516_v49  ;;  %1869 = vmatprep.mubr.msk.bf16.mxu0 %vm432_vm0, %v955_v27  ;;  %v931_v39 = vmax.f32 %v872_v32, 0.0 }
 0x1e8   : > { %v875_v35 = vpop.f32.mrf.mxu1  ;;  %1206 = vmatmul.mubr.bf16.gmra.mxu0 %v954_v30 }
 0x1e9   : > { %v876_v36 = vadd.f32 %v875_v35, %v2514_v48  ;;  %v932_v37 = vmax.f32 %v874_v33, 0.0 }
 0x1ea   : > { %v879_v38 = vpop.f32.mrf.mxu1 }
 0x1eb   : > { %v933_v40 = vmax.f32 %v876_v36, 0.0  ;;  %v956_v44 = vpack.c.bf16 %v932_v37, %v930_v41  ;;  %v880_v50 = vadd.f32 %v879_v38, %v2516_v49  ;;  %v997_v41 = vsub.s32 6, %v2383_v21 }
 0x1ec   : > { %v881_v42 = vpop.f32.mrf.mxu1 }
 0x1ed   : > { %v957_v43 = vpack.c.bf16 %v933_v40, %v931_v39  ;;  %v882_v46 = vadd.f32 %v881_v42, %v2514_v48  ;;  %v934_v57 = vmax.f32 %v880_v50, 0.0  ;;  %v2107_v39 = vld [vmem:[%s2716_s1 + $0x2d4] ss:$8 sps:$4 sm:$0xff]   ;;  %v2108_v40 = vld [vmem:[%s2716_s1 + $0x2c0] ss:$8 sps:$4 sm:$0xff]   ;;  %v993_v42 = vsub.s32 2, %v2383_v21 }
 0x1ee   : > { %v883_v45 = vpop.f32.mrf.mxu1  ;;  %1529 = vmatprep.subr.bf16.mxu1 %v2107_v39 }
 0x1ef   : > { %v884_v47 = vadd.f32 %v883_v45, %v2516_v49  ;;  %1870 = vmatprep.mubr.msk.bf16.mxu0 %vm432_vm0, %v957_v43  ;;  %v935_v55 = vmax.f32 %v882_v46, 0.0  ;;  %v998_v43 = vrot.slane %v2390_v24, %v997_v41 }
 0x1f0   : > { %v885_v51 = vpop.f32.mrf.mxu1  ;;  %1216 = vmatmul.mubr.bf16.gmra.mxu0 %v956_v44  ;;  %v994_v44 = vrot.slane %v2390_v24, %v993_v42 }
 0x1f1   : > { %v886_v52 = vadd.f32 %v885_v51, %v2514_v48  ;;  %v936_v53 = vmax.f32 %v884_v47, 0.0  ;;  %v2574_v46 = vrot.slane %v998_v43, %v993_v42 }
 0x1f2   : > { %v889_v54 = vpop.f32.mrf.mxu1  ;;  %v2576_v47 = vrot.slane %v994_v44, %v993_v42 }
 0x1f3   : > { %v937_v56 = vmax.f32 %v886_v52, 0.0  ;;  %v958_v60 = vpack.c.bf16 %v936_v53, %v934_v57  ;;  %v890_v0 = vadd.f32 %v889_v54, %v2516_v49 }
 0x1f4   : > { %v891_v58 = vpop.f32.mrf.mxu1 }
 0x1f5   : > { %v959_v59 = vpack.c.bf16 %v937_v56, %v935_v55  ;;  %v892_v62 = vadd.f32 %v891_v58, %v2514_v48  ;;  %v938_v7 = vmax.f32 %v890_v0, 0.0 }
 0x1f6   : > { %v893_v61 = vpop.f32.mrf.mxu1 }
 0x1f7   : > { %v894_v63 = vadd.f32 %v893_v61, %v2516_v49  ;;  %1871 = vmatprep.mubr.msk.bf16.mxu0 %vm432_vm0, %v959_v59  ;;  %v939_v5 = vmax.f32 %v892_v62, 0.0 }
 0x1f8   : > { %v895_v1 = vpop.f32.mrf.mxu1  ;;  %1226 = vmatmul.mubr.bf16.gmra.mxu0 %v958_v60 }
 0x1f9   : > { %v896_v2 = vadd.f32 %v895_v1, %v2514_v48  ;;  %v940_v3 = vmax.f32 %v894_v63, 0.0 }
 0x1fa   : > { %v899_v4 = vpop.f32.mrf.mxu1 }
 0x1fb   : > { %v941_v6 = vmax.f32 %v896_v2, 0.0  ;;  %v960_v10 = vpack.c.bf16 %v940_v3, %v938_v7  ;;  %v900_v14 = vadd.f32 %v899_v4, %v2516_v49 }
 0x1fc   : > { %v901_v8 = vpop.f32.mrf.mxu1 }
 0x1fd   : > { %v961_v9 = vpack.c.bf16 %v941_v6, %v939_v5  ;;  %v902_v12 = vadd.f32 %v901_v8, %v2514_v48  ;;  %v942_v19 = vmax.f32 %v900_v14, 0.0 }
 0x1fe   : > { %v903_v11 = vpop.f32.mrf.mxu1 }
 0x1ff   : > { %v904_v13 = vadd.f32 %v903_v11, %v2516_v49  ;;  %1872 = vmatprep.mubr.msk.bf16.mxu0 %vm432_vm0, %v961_v9  ;;  %v943_v28 = vmax.f32 %v902_v12, 0.0 }
 0x200   : > { %v905_v15 = vpop.f32.mrf.mxu1  ;;  %1236 = vmatmul.mubr.bf16.gmra.mxu0 %v960_v10 }
 0x201   : > { %v906_v16 = vadd.f32 %v905_v15, %v2514_v48  ;;  %v944_v17 = vmax.f32 %v904_v13, 0.0 }
 0x202   : > { %v909_v29 = vpop.f32.mrf.mxu1 }
 0x203   : > { %v945_v18 = vmax.f32 %v906_v16, 0.0  ;;  %v962_v23 = vpack.c.bf16 %v944_v17, %v942_v19  ;;  %v910_v30 = vadd.f32 %v909_v29, %v2516_v49 }
 0x204   : > { %v911_v20 = vpop.f32.mrf.mxu1 }
 0x205   : > { %v963_v22 = vpack.c.bf16 %v945_v18, %v943_v28  ;;  %v912_v26 = vadd.f32 %v911_v20, %v2514_v48  ;;  %v946_v36 = vmax.f32 %v910_v30, 0.0 }
 0x206   : > { %v913_v25 = vpop.f32.mrf.mxu1 }
 0x207   : > { %v914_v27 = vadd.f32 %v913_v25, %v2516_v49  ;;  %1873 = vmatprep.mubr.msk.bf16.mxu0 %vm432_vm0, %v963_v22  ;;  %v947_v34 = vmax.f32 %v912_v26, 0.0  ;;  %v2105_v49 = vld [vmem:[%s2716_s1 + $0x2d0] ss:$8 sps:$4 sm:$0xff]  }
 0x208   : > { %v915_v31 = vpop.f32.mrf.mxu1  ;;  %1246 = vmatmul.mubr.bf16.gmra.mxu0 %v962_v23  ;;  %1530 = vmatpush2.bf16.msra.mxu1 %v2105_v49 }
 0x209   : > { %v916_v32 = vadd.f32 %v915_v31, %v2514_v48  ;;  %v948_v33 = vmax.f32 %v914_v27, 0.0  ;;  %v2110_v48 = vld [vmem:[%s2716_s1 + $0x2c4] ss:$8 sps:$4 sm:$0xff]  }
 0x20a   : > { %1531 = vmatprep.subr.bf16.mxu1 %v2110_v48 }
 0x20b   : > { %v949_v35 = vmax.f32 %v916_v32, 0.0  ;;  %v964_v38 = vpack.c.bf16 %v948_v33, %v946_v36 }
 0x20c   : > { %1532 = vmatpush2.bf16.msra.mxu1 %v2108_v40 }
 0x20d   : > { %v965_v37 = vpack.c.bf16 %v949_v35, %v947_v34 }
 0x20f   : > { %1874 = vmatprep.mubr.msk.bf16.mxu0 %vm432_vm0, %v965_v37 }
 0x210   : > { %1256 = vmatmul.mubr.bf16.gmra.mxu0 %v964_v38 }
 0x298   : > { %v1187_v45 = vpop.f32.mrf.mxu0 }
 0x299   : > { %v1188_v54 = vadd.f32 %v1187_v45, %v2576_v47 }
 0x29a   : > { %v1189_v50 = vpop.f32.mrf.mxu0 }
 0x29b   : > { %v1190_v52 = vadd.f32 %v1189_v50, %v2574_v46  ;;  %v1266_v61 = vmax.f32 %v1188_v54, 0.0 }
 0x29c   : > { %v1191_v51 = vpop.f32.mrf.mxu0 }
 0x29d   : > { %v1192_v53 = vadd.f32 %v1191_v51, %v2576_v47  ;;  %v1267_v59 = vmax.f32 %v1190_v52, 0.0 }
 0x29e   : > { %v1193_v55 = vpop.f32.mrf.mxu0 }
 0x29f   : > { %v1194_v56 = vadd.f32 %v1193_v55, %v2574_v46  ;;  %v1268_v57 = vmax.f32 %v1192_v53, 0.0 }
 0x2a0   : > { %v1197_v58 = vpop.f32.mrf.mxu0 }
 0x2a1   : > { %v1269_v60 = vmax.f32 %v1194_v56, 0.0  ;;  %v1298_v0 = vpack.c.bf16 %v1268_v57, %v1266_v61  ;;  %v1198_v4 = vadd.f32 %v1197_v58, %v2576_v47 }
 0x2a2   : > { %v1199_v62 = vpop.f32.mrf.mxu0 }
 0x2a3   : > { %v1299_v63 = vpack.c.bf16 %v1269_v60, %v1267_v59  ;;  %v1200_v2 = vadd.f32 %v1199_v62, %v2574_v46  ;;  %v1270_v11 = vmax.f32 %v1198_v4, 0.0 }
 0x2a4   : > { %v1201_v1 = vpop.f32.mrf.mxu0 }
 0x2a5   : > { %v1202_v3 = vadd.f32 %v1201_v1, %v2576_v47  ;;  %1923 = vmatprep.mubr.msk.bf16.mxu1 %vm432_vm0, %v1299_v63  ;;  %v1271_v9 = vmax.f32 %v1200_v2, 0.0 }
 0x2a6   : > { %v1203_v5 = vpop.f32.mrf.mxu0  ;;  %1534 = vmatmul.mubr.bf16.vlgmr.msra.gmra.mxu1 %v1298_v0 }
 0x2a7   : > { %v1204_v6 = vadd.f32 %v1203_v5, %v2574_v46  ;;  %v1272_v7 = vmax.f32 %v1202_v3, 0.0 }
 0x2a8   : > { %v1207_v8 = vpop.f32.mrf.mxu0 }
 0x2a9   : > { %v1273_v10 = vmax.f32 %v1204_v6, 0.0  ;;  %v1300_v14 = vpack.c.bf16 %v1272_v7, %v1270_v11  ;;  %v1208_v29 = vadd.f32 %v1207_v8, %v2576_v47 }
 0x2aa   : > { %v1209_v12 = vpop.f32.mrf.mxu0 }
 0x2ab   : > { %v1301_v13 = vpack.c.bf16 %v1273_v10, %v1271_v9  ;;  %v1210_v16 = vadd.f32 %v1209_v12, %v2574_v46  ;;  %v1274_v25 = vmax.f32 %v1208_v29, 0.0 }
 0x2ac   : > { %v1211_v15 = vpop.f32.mrf.mxu0 }
 0x2ad   : > { %v1212_v17 = vadd.f32 %v1211_v15, %v2576_v47  ;;  %1924 = vmatprep.mubr.msk.bf16.mxu1 %vm432_vm0, %v1301_v13  ;;  %v1275_v22 = vmax.f32 %v1210_v16, 0.0 }
 0x2ae   : > { %v1213_v28 = vpop.f32.mrf.mxu0  ;;  %1544 = vmatmul.mubr.bf16.gmra.mxu1 %v1300_v14 }
 0x2af   : > { %v1214_v18 = vadd.f32 %v1213_v28, %v2574_v46  ;;  %v1276_v19 = vmax.f32 %v1212_v17, 0.0 }
 0x2b0   : > { %v1217_v20 = vpop.f32.mrf.mxu0 }
 0x2b1   : > { %v1277_v23 = vmax.f32 %v1214_v18, 0.0  ;;  %v1302_v30 = vpack.c.bf16 %v1276_v19, %v1274_v25  ;;  %v1218_v34 = vadd.f32 %v1217_v20, %v2576_v47 }
 0x2b2   : > { %v1219_v26 = vpop.f32.mrf.mxu0 }
 0x2b3   : > { %v1303_v27 = vpack.c.bf16 %v1277_v23, %v1275_v22  ;;  %v1220_v32 = vadd.f32 %v1219_v26, %v2574_v46  ;;  %v1278_v48 = vmax.f32 %v1218_v34, 0.0 }
 0x2b4   : > { %v1221_v31 = vpop.f32.mrf.mxu0 }
 0x2b5   : > { %v1222_v33 = vadd.f32 %v1221_v31, %v2576_v47  ;;  %1925 = vmatprep.mubr.msk.bf16.mxu1 %vm432_vm0, %v1303_v27  ;;  %v1279_v39 = vmax.f32 %v1220_v32, 0.0 }
 0x2b6   : > { %v1223_v35 = vpop.f32.mrf.mxu0  ;;  %1554 = vmatmul.mubr.bf16.gmra.mxu1 %v1302_v30 }
 0x2b7   : > { %v1224_v36 = vadd.f32 %v1223_v35, %v2574_v46  ;;  %v1280_v37 = vmax.f32 %v1222_v33, 0.0 }
 0x2b8   : > { %v1227_v38 = vpop.f32.mrf.mxu0 }
 0x2b9   : > { %v1281_v49 = vmax.f32 %v1224_v36, 0.0  ;;  %v1304_v42 = vpack.c.bf16 %v1280_v37, %v1278_v48  ;;  %v1228_v50 = vadd.f32 %v1227_v38, %v2576_v47 }
 0x2ba   : > { %v1229_v40 = vpop.f32.mrf.mxu0 }
 0x2bb   : > { %v1305_v41 = vpack.c.bf16 %v1281_v49, %v1279_v39  ;;  %v1230_v44 = vadd.f32 %v1229_v40, %v2574_v46  ;;  %v1282_v57 = vmax.f32 %v1228_v50, 0.0  ;;  %v1341_v39 = vsub.s32 3, %v2383_v21 }
 0x2bc   : > { %v1231_v43 = vpop.f32.mrf.mxu0  ;;  %v1345_v49 = vsub.s32 7, %v2383_v21 }
 0x2bd   : > { %v1232_v45 = vadd.f32 %v1231_v43, %v2576_v47  ;;  %1926 = vmatprep.mubr.msk.bf16.mxu1 %vm432_vm0, %v1305_v41  ;;  %v1283_v55 = vmax.f32 %v1230_v44, 0.0 }
 0x2be   : > { %v1233_v51 = vpop.f32.mrf.mxu0  ;;  %1564 = vmatmul.mubr.bf16.gmra.mxu1 %v1304_v42  ;;  %v1346_v48 = vrot.slane %v2390_v24, %v1345_v49 }
 0x2bf   : > { %v1234_v52 = vadd.f32 %v1233_v51, %v2574_v46  ;;  %v1284_v53 = vmax.f32 %v1232_v45, 0.0 }
 0x2c0   : > { %v1237_v54 = vpop.f32.mrf.mxu0 }
 0x2c1   : > { %v1285_v56 = vmax.f32 %v1234_v52, 0.0  ;;  %v1306_v60 = vpack.c.bf16 %v1284_v53, %v1282_v57  ;;  %v1238_v0 = vadd.f32 %v1237_v54, %v2576_v47 }
 0x2c2   : > { %v1239_v58 = vpop.f32.mrf.mxu0 }
 0x2c3   : > { %v1307_v59 = vpack.c.bf16 %v1285_v56, %v1283_v55  ;;  %v1240_v62 = vadd.f32 %v1239_v58, %v2574_v46  ;;  %v1286_v7 = vmax.f32 %v1238_v0, 0.0 }
 0x2c4   : > { %v1241_v61 = vpop.f32.mrf.mxu0 }
 0x2c5   : > { %v1242_v63 = vadd.f32 %v1241_v61, %v2576_v47  ;;  %1927 = vmatprep.mubr.msk.bf16.mxu1 %vm432_vm0, %v1307_v59  ;;  %v1287_v5 = vmax.f32 %v1240_v62, 0.0 }
 0x2c6   : > { %v1243_v1 = vpop.f32.mrf.mxu0  ;;  %1574 = vmatmul.mubr.bf16.gmra.mxu1 %v1306_v60 }
 0x2c7   : > { %v1244_v2 = vadd.f32 %v1243_v1, %v2574_v46  ;;  %v1288_v3 = vmax.f32 %v1242_v63, 0.0 }
 0x2c8   : > { %v1247_v4 = vpop.f32.mrf.mxu0 }
 0x2c9   : > { %v1289_v6 = vmax.f32 %v1244_v2, 0.0  ;;  %v1308_v10 = vpack.c.bf16 %v1288_v3, %v1286_v7  ;;  %v1248_v14 = vadd.f32 %v1247_v4, %v2576_v47 }
 0x2ca   : > { %v1249_v8 = vpop.f32.mrf.mxu0 }
 0x2cb   : > { %v1309_v9 = vpack.c.bf16 %v1289_v6, %v1287_v5  ;;  %v1250_v12 = vadd.f32 %v1249_v8, %v2574_v46  ;;  %v1290_v19 = vmax.f32 %v1248_v14, 0.0 }
 0x2cc   : > { %v1251_v11 = vpop.f32.mrf.mxu0 }
 0x2cd   : > { %v1252_v13 = vadd.f32 %v1251_v11, %v2576_v47  ;;  %1928 = vmatprep.mubr.msk.bf16.mxu1 %vm432_vm0, %v1309_v9  ;;  %v1291_v28 = vmax.f32 %v1250_v12, 0.0 }
 0x2ce   : > { %v1253_v15 = vpop.f32.mrf.mxu0  ;;  %1584 = vmatmul.mubr.bf16.gmra.mxu1 %v1308_v10 }
 0x2cf   : > { %v1254_v16 = vadd.f32 %v1253_v15, %v2574_v46  ;;  %v1292_v17 = vmax.f32 %v1252_v13, 0.0 }
 0x2d0   : > { %v1257_v29 = vpop.f32.mrf.mxu0 }
 0x2d1   : > { %v1293_v18 = vmax.f32 %v1254_v16, 0.0  ;;  %v1310_v23 = vpack.c.bf16 %v1292_v17, %v1290_v19  ;;  %v1258_v30 = vadd.f32 %v1257_v29, %v2576_v47 }
 0x2d2   : > { %v1259_v20 = vpop.f32.mrf.mxu0 }
 0x2d3   : > { %v1311_v22 = vpack.c.bf16 %v1293_v18, %v1291_v28  ;;  %v1260_v26 = vadd.f32 %v1259_v20, %v2574_v46  ;;  %v1294_v36 = vmax.f32 %v1258_v30, 0.0 }
 0x2d4   : > { %v1261_v25 = vpop.f32.mrf.mxu0 }
 0x2d5   : > { %v1262_v27 = vadd.f32 %v1261_v25, %v2576_v47  ;;  %1929 = vmatprep.mubr.msk.bf16.mxu1 %vm432_vm0, %v1311_v22  ;;  %v1295_v34 = vmax.f32 %v1260_v26, 0.0  ;;  %v1342_v47 = vrot.slane %v2390_v24, %v1341_v39 }
 0x2d6   : > { %v1263_v31 = vpop.f32.mrf.mxu0  ;;  %1594 = vmatmul.mubr.bf16.gmra.mxu1 %v1310_v23 }
 0x2d7   : > { %v1264_v32 = vadd.f32 %v1263_v31, %v2574_v46  ;;  %v1296_v33 = vmax.f32 %v1262_v27, 0.0  ;;  %v2623_v40 = vrot.slane %v1342_v47, %v1341_v39  ;;  %v2625_v46 = vrot.slane %v1346_v48, %v1341_v39 }
 0x2d9   : > { %v1297_v35 = vmax.f32 %v1264_v32, 0.0  ;;  %v1312_v38 = vpack.c.bf16 %v1296_v33, %v1294_v36 }
 0x2db   : > { %v1313_v37 = vpack.c.bf16 %v1297_v35, %v1295_v34 }
 0x2dd   : > { %1930 = vmatprep.mubr.msk.bf16.mxu1 %vm432_vm0, %v1313_v37 }
 0x2de   : > { %1604 = vmatmul.mubr.bf16.gmra.mxu1 %v1312_v38 }
 0x366   : > { %v1535_v21 = vpop.f32.mrf.mxu1 }
 0x367   : > { %v1536_v41 = vadd.f32 %v1535_v21, %v2623_v40 }
 0x368   : > { %v1537_v42 = vpop.f32.mrf.mxu1 }
 0x369   : > { %1614 = vst [vmem:[%s2630_s18] sm:$0xff] %v1536_v41  ;;  %v1538_v24 = vadd.f32 %v1537_v42, %v2625_v46 }
 0x36a   : > { %v1539_v43 = vpop.f32.mrf.mxu1 }
 0x36b   : > { %1615 = vst.msk [vmem:[%s2630_s18 + $0x8] sm:$0xff] %vm432_vm0, %v1538_v24  ;;  %v1540_v44 = vadd.f32 %v1539_v43, %v2623_v40 }
 0x36c   : > { %v1541_v45 = vpop.f32.mrf.mxu1 }
 0x36d   : > { %1616 = vst [vmem:[%s2630_s18 + $0x10] sm:$0xff] %v1540_v44  ;;  %v1542_v50 = vadd.f32 %v1541_v45, %v2625_v46 }
 0x36e   : > { %v1545_v51 = vpop.f32.mrf.mxu1 }
 0x36f   : > { %1617 = vst.msk [vmem:[%s2630_s18 + $0x18] sm:$0xff] %vm432_vm0, %v1542_v50  ;;  %v1546_v52 = vadd.f32 %v1545_v51, %v2623_v40 }
 0x370   : > { %v1547_v53 = vpop.f32.mrf.mxu1 }
 0x371   : > { %1618 = vst [vmem:[%s2630_s18 + $0x20] sm:$0xff] %v1546_v52  ;;  %v1548_v54 = vadd.f32 %v1547_v53, %v2625_v46 }
 0x372   : > { %v1549_v55 = vpop.f32.mrf.mxu1 }
 0x373   : > { %1619 = vst.msk [vmem:[%s2630_s18 + $0x28] sm:$0xff] %vm432_vm0, %v1548_v54  ;;  %v1550_v56 = vadd.f32 %v1549_v55, %v2623_v40 }
 0x374   : > { %v1551_v57 = vpop.f32.mrf.mxu1 }
 0x375   : > { %1620 = vst [vmem:[%s2630_s18 + $0x30] sm:$0xff] %v1550_v56  ;;  %v1552_v58 = vadd.f32 %v1551_v57, %v2625_v46 }
 0x376   : > { %v1555_v59 = vpop.f32.mrf.mxu1 }
 0x377   : > { %1621 = vst.msk [vmem:[%s2630_s18 + $0x38] sm:$0xff] %vm432_vm0, %v1552_v58  ;;  %v1556_v60 = vadd.f32 %v1555_v59, %v2623_v40 }
 0x378   : > { %v1557_v61 = vpop.f32.mrf.mxu1 }
 0x379   : > { %1622 = vst [vmem:[%s2630_s18 + $0x40] sm:$0xff] %v1556_v60  ;;  %v1558_v62 = vadd.f32 %v1557_v61, %v2625_v46 }
 0x37a   : > { %v1559_v63 = vpop.f32.mrf.mxu1 }
 0x37b   : > { %1623 = vst.msk [vmem:[%s2630_s18 + $0x48] sm:$0xff] %vm432_vm0, %v1558_v62  ;;  %v1560_v0 = vadd.f32 %v1559_v63, %v2623_v40 }
 0x37c   : > { %v1561_v1 = vpop.f32.mrf.mxu1 }
 0x37d   : > { %1624 = vst [vmem:[%s2630_s18 + $0x50] sm:$0xff] %v1560_v0  ;;  %v1562_v2 = vadd.f32 %v1561_v1, %v2625_v46 }
 0x37e   : > { %v1565_v3 = vpop.f32.mrf.mxu1 }
 0x37f   : > { %1625 = vst.msk [vmem:[%s2630_s18 + $0x58] sm:$0xff] %vm432_vm0, %v1562_v2  ;;  %v1566_v4 = vadd.f32 %v1565_v3, %v2623_v40 }
 0x380   : > { %v1567_v5 = vpop.f32.mrf.mxu1 }
 0x381   : > { %1626 = vst [vmem:[%s2630_s18 + $0x60] sm:$0xff] %v1566_v4  ;;  %v1568_v6 = vadd.f32 %v1567_v5, %v2625_v46 }
 0x382   : > { %v1569_v7 = vpop.f32.mrf.mxu1 }
 0x383   : > { %1627 = vst.msk [vmem:[%s2630_s18 + $0x68] sm:$0xff] %vm432_vm0, %v1568_v6  ;;  %v1570_v8 = vadd.f32 %v1569_v7, %v2623_v40 }
 0x384   : > { %v1571_v9 = vpop.f32.mrf.mxu1 }
 0x385   : > { %1628 = vst [vmem:[%s2630_s18 + $0x70] sm:$0xff] %v1570_v8  ;;  %v1572_v10 = vadd.f32 %v1571_v9, %v2625_v46 }
 0x386   : > { %v1575_v11 = vpop.f32.mrf.mxu1 }
 0x387   : > { %1629 = vst.msk [vmem:[%s2630_s18 + $0x78] sm:$0xff] %vm432_vm0, %v1572_v10  ;;  %v1576_v12 = vadd.f32 %v1575_v11, %v2623_v40 }
 0x388   : > { %v1577_v13 = vpop.f32.mrf.mxu1 }
 0x389   : > { %1630 = vst [vmem:[%s2630_s18 + $0x80] sm:$0xff] %v1576_v12  ;;  %v1578_v14 = vadd.f32 %v1577_v13, %v2625_v46 }
 0x38a   : > { %v1579_v15 = vpop.f32.mrf.mxu1 }
 0x38b   : > { %1631 = vst.msk [vmem:[%s2630_s18 + $0x88] sm:$0xff] %vm432_vm0, %v1578_v14  ;;  %v1580_v16 = vadd.f32 %v1579_v15, %v2623_v40 }
 0x38c   : > { %v1581_v17 = vpop.f32.mrf.mxu1 }
 0x38d   : > { %1632 = vst [vmem:[%s2630_s18 + $0x90] sm:$0xff] %v1580_v16  ;;  %v1582_v29 = vadd.f32 %v1581_v17, %v2625_v46 }
 0x38e   : > { %v1585_v28 = vpop.f32.mrf.mxu1 }
 0x38f   : > { %1633 = vst.msk [vmem:[%s2630_s18 + $0x98] sm:$0xff] %vm432_vm0, %v1582_v29  ;;  %v1586_v18 = vadd.f32 %v1585_v28, %v2623_v40 }
 0x390   : > { %v1587_v19 = vpop.f32.mrf.mxu1 }
 0x391   : > { %1634 = vst [vmem:[%s2630_s18 + $0xa0] sm:$0xff] %v1586_v18  ;;  %v1588_v20 = vadd.f32 %v1587_v19, %v2625_v46 }
 0x392   : > { %v1589_v22 = vpop.f32.mrf.mxu1 }
 0x393   : > { %1635 = vst.msk [vmem:[%s2630_s18 + $0xa8] sm:$0xff] %vm432_vm0, %v1588_v20  ;;  %v1590_v23 = vadd.f32 %v1589_v22, %v2623_v40 }
 0x394   : > { %v1591_v25 = vpop.f32.mrf.mxu1 }
 0x395   : > { %1636 = vst [vmem:[%s2630_s18 + $0xb0] sm:$0xff] %v1590_v23  ;;  %v1592_v26 = vadd.f32 %v1591_v25, %v2625_v46 }
 0x396   : > { %v1595_v27 = vpop.f32.mrf.mxu1 }
 0x397   : > { %1637 = vst.msk [vmem:[%s2630_s18 + $0xb8] sm:$0xff] %vm432_vm0, %v1592_v26  ;;  %v1596_v30 = vadd.f32 %v1595_v27, %v2623_v40 }
 0x398   : > { %v1597_v31 = vpop.f32.mrf.mxu1 }
 0x399   : > { %1638 = vst [vmem:[%s2630_s18 + $0xc0] sm:$0xff] %v1596_v30  ;;  %v1598_v32 = vadd.f32 %v1597_v31, %v2625_v46 }
 0x39a   : > { %v1599_v33 = vpop.f32.mrf.mxu1 }
 0x39b   : > { %1639 = vst.msk [vmem:[%s2630_s18 + $0xc8] sm:$0xff] %vm432_vm0, %v1598_v32  ;;  %v1600_v34 = vadd.f32 %v1599_v33, %v2623_v40 }
 0x39c   : > { %v1601_v35 = vpop.f32.mrf.mxu1 }
 0x39d   : > { %1640 = vst [vmem:[%s2630_s18 + $0xd0] sm:$0xff] %v1600_v34  ;;  %v1602_v36 = vadd.f32 %v1601_v35, %v2625_v46 }
 0x39e   : > { %v1605_v37 = vpop.f32.mrf.mxu1 }
 0x39f   : > { %1641 = vst.msk [vmem:[%s2630_s18 + $0xd8] sm:$0xff] %vm432_vm0, %v1602_v36  ;;  %v1606_v38 = vadd.f32 %v1605_v37, %v2623_v40 }
 0x3a0   : > { %v1607_v39 = vpop.f32.mrf.mxu1 }
 0x3a1   : > { %1642 = vst [vmem:[%s2630_s18 + $0xe0] sm:$0xff] %v1606_v38  ;;  %v1608_v49 = vadd.f32 %v1607_v39, %v2625_v46 }
 0x3a2   : > { %v1609_v47 = vpop.f32.mrf.mxu1 }
 0x3a3   : > { %1643 = vst.msk [vmem:[%s2630_s18 + $0xe8] sm:$0xff] %vm432_vm0, %v1608_v49  ;;  %v1610_v48 = vadd.f32 %v1609_v47, %v2623_v40 }
 0x3a4   : > { %v1611_v21 = vpop.f32.mrf.mxu1 }
 0x3a5   : > { %1644 = vst [vmem:[%s2630_s18 + $0xf0] sm:$0xff] %v1610_v48  ;;  %v1612_v41 = vadd.f32 %v1611_v21, %v2625_v46 }
 0x3a7   : > { %1645 = vst.msk [vmem:[%s2630_s18 + $0xf8] sm:$0xff] %vm432_vm0, %v1612_v41 }
 0x3a8 PF: > { %s13_s12 = sadd.s32 1, %s2117_s12  }
 0x3a9   : > { %p10_p4 = scmp.ge.s32.totalorder %s13_s12, 4  }
 0x3ab   :  { %12 = sbr.rel (!%p10_p4) target bundleno = 1 (0x1), region = 65 }

</bundles_post_ra>
